<compile_context>
chip_gen: v7x
topology: tpu7x:2x2x1
jax: 0.10.0
libtpu: 0.0.40
codegen_flags: <defaults>
</compile_context>

<pallas_src>
import functools

import jax
import jax.numpy as jnp
from jax.experimental import pallas as pl
from jax.experimental.pallas import tpu as pltpu


@functools.lru_cache(maxsize=None)
def _make_rmsnorm_kernel(eps: float, x_dtype_name: str):
    x_dtype = jnp.dtype(x_dtype_name)

    def rmsnorm_kernel(x_ref, w_ref, o_ref):
        # One (row_tile, dim) tile: mean-of-squares over the lane (dim) axis,
        # rsqrt, scale, downcast to x dtype (PyTorch `.type_as(x)` rounding),
        # then weight multiply in the promoted output dtype.
        x_f32 = x_ref[...].astype(jnp.float32)                    # x.float()
        ms = jnp.mean(x_f32 * x_f32, axis=-1, keepdims=True)      # pow(2).mean(-1)
        inv = jax.lax.rsqrt(ms + eps)                             # rsqrt(... + eps)
        normed = (x_f32 * inv).astype(x_dtype)                    # .type_as(x)
        # w_ref is (1, dim) and broadcasts across the sublane (row) axis.
        # Promote both operands to o_ref.dtype (PyTorch type-promotion of
        # `output * self.weight`, e.g. bf16 * f32 -> f32).
        o_ref[...] = normed.astype(o_ref.dtype) * w_ref[...].astype(o_ref.dtype)

    return rmsnorm_kernel


def _vmem_config():
    """Generation-aware (tile VMEM budget, vmem_limit_bytes)."""
    try:
        cap = pltpu.get_tpu_info().vmem_capacity_bytes
    except Exception:
        cap = 128 << 20
    if cap <= (64 << 20):
        # v7x-class: 64 MiB/TC physical. Leave headroom for Mosaic internal
        # scratch, the weight block and semaphores.
        return 8 << 20, 36 << 20
    # v5e / v6e: 128 MiB physical, 16-32 MiB scoped default.
    return 16 << 20, 48 << 20


def _choose_row_tile(rows: int, dim: int, x_itemsize: int, out_itemsize: int,
                     vmem_budget_bytes: int) -> int:
    """Pick a row tile: big enough to amortize step overhead, small enough to
    keep the pipeline in steady state and the VMEM footprint modest."""
    # Sublane packing: 8 rows/f32, 16 rows/bf16, 32 rows/int8-fp8 per vreg.
    sublane = max(8, 32 // max(x_itemsize, 1))

    # Per-row steady-state footprint: double-buffered input (x dtype),
    # double-buffered output (out dtype), plus the f32 intermediates the
    # kernel materializes during compute (x_f32, squared temp, normed ~ 12 B).
    bytes_per_row = dim * (2 * x_itemsize + 2 * out_itemsize + 12)
    tile = vmem_budget_bytes // max(bytes_per_row, 1)
    tile = max((tile // sublane) * sublane, sublane)

    # Cap per-step traffic by element count (not a fixed row count): ~8 MiB of
    # input per step is plenty to amortize the ~0.35 us fixed step overhead,
    # even at 3.2 TB/s (v7x).
    max_rows_by_elems = (8 << 20) // max(x_itemsize, 1) // max(dim, 1)
    max_rows_by_elems = max((max_rows_by_elems // sublane) * sublane, sublane)
    tile = min(tile, max_rows_by_elems)

    # Prefer >= 8 grid steps (>= 4 per TensorCore on v7x) when there is enough
    # work, so the Buffered(2) pipeline has a steady state and the megacore
    # row split stays balanced.
    if rows >= 8 * sublane:
        target = max((rows // 8 // sublane) * sublane, sublane)
        tile = min(tile, target)

    # No point in a tile larger than all rows (rounded up to a sublane).
    rows_rounded = ((rows + sublane - 1) // sublane) * sublane
    tile = min(tile, max(rows_rounded, sublane))
    return tile


@functools.partial(jax.jit, static_argnames=("eps", "row_tile"))
def rmsnorm(x: jax.Array, weight: jax.Array, eps: float = 1e-6,
            row_tile: int | None = None) -> jax.Array:
    """RMSNorm over the last axis of x, scaled by weight (shape (dim,))."""
    orig_shape = x.shape
    dim = orig_shape[-1]
    assert weight.shape == (dim,)

    out_dtype = jnp.promote_types(x.dtype, weight.dtype)

    x2d = x.reshape(-1, dim)
    rows = x2d.shape[0]
    x_itemsize = jnp.dtype(x.dtype).itemsize
    out_itemsize = jnp.dtype(out_dtype).itemsize

    tile_budget, vmem_limit_bytes = _vmem_config()
    if row_tile is None:
        row_tile = _choose_row_tile(rows, dim, x_itemsize, out_itemsize,
                                    tile_budget)

    grid = (pl.cdiv(rows, row_tile),)       # ragged tail masked by Pallas
    w2d = weight.reshape(1, dim)            # lane-dense, VMEM-resident block

    kernel = _make_rmsnorm_kernel(float(eps), jnp.dtype(x.dtype).name)

    # TODO(synk): if profiling on v7x shows only one TensorCore active, switch
    # dimension_semantics to pltpu.CORE_PARALLEL or add an explicit leading
    # grid axis of size 2 to force the megacore split of the row axis.
    out2d = pl.pallas_call(
        kernel,
        out_shape=jax.ShapeDtypeStruct((rows, dim), out_dtype),
        grid_spec=pltpu.PrefetchScalarGridSpec(
            num_scalar_prefetch=0,
            grid=grid,
            in_specs=[
                pl.BlockSpec((row_tile, dim), lambda i: (i, 0)),  # x tile
                pl.BlockSpec((1, dim), lambda i: (0, 0)),         # weight
            ],
            out_specs=pl.BlockSpec((row_tile, dim), lambda i: (i, 0)),
        ),
        compiler_params=pltpu.CompilerParams(
            dimension_semantics=("parallel",),
            vmem_limit_bytes=vmem_limit_bytes,
        ),
    )(x2d, w2d)

    return out2d.reshape(orig_shape[:-1] + (dim,))


def rmsnorm_ref(x, weight, eps=1e-6):
    x_f32 = x.astype(jnp.float32)
    inv = jax.lax.rsqrt(jnp.mean(x_f32 * x_f32, axis=-1, keepdims=True) + eps)
    normed = (x_f32 * inv).astype(x.dtype)
    out_dtype = jnp.promote_types(x.dtype, weight.dtype)
    return normed.astype(out_dtype) * weight.astype(out_dtype)


if __name__ == "__main__":
    eps = 1e-6
    key = jax.random.PRNGKey(0)

    # Main check: small llama-like shape, evenly tiled, f32/f32.
    batch, seq, dim = 2, 8, 128
    x = jax.random.normal(key, (batch, seq, dim), dtype=jnp.float32)
    weight = jnp.ones((dim,), dtype=jnp.float32)  # nn.Parameter(torch.ones(dim))

    out = jax.block_until_ready(rmsnorm(x, weight, eps=eps))
    ref = rmsnorm_ref(x, weight, eps=eps)
    assert out.shape == x.shape and out.dtype == ref.dtype
    assert jnp.allclose(out, ref, atol=1e-5, rtol=1e-5)

    # Ragged row count (rows not a multiple of the tile): exercises the
    # cdiv + edge-masking path.
    b2, s2, d2 = 3, 5, 256
    x2 = jax.random.normal(jax.random.PRNGKey(1), (b2, s2, d2), dtype=jnp.float32)
    w2 = jnp.ones((d2,), dtype=jnp.float32)
    out2 = jax.block_until_ready(rmsnorm(x2, w2, eps=eps))
    assert jnp.allclose(out2, rmsnorm_ref(x2, w2, eps=eps), atol=1e-5, rtol=1e-5)

    # Mixed-dtype check (PyTorch promotion): bf16 activations, f32 weight
    # -> type_as(x) rounds to bf16, then multiply promotes to f32.
    x3 = jax.random.normal(jax.random.PRNGKey(2), (2, 8, 128), dtype=jnp.bfloat16)
    w3 = jax.random.normal(jax.random.PRNGKey(3), (128,), dtype=jnp.float32) * 0.1 + 1.0
    out3 = jax.block_until_ready(rmsnorm(x3, w3, eps=eps))
    ref3 = rmsnorm_ref(x3, w3, eps=eps)
    assert out3.dtype == jnp.float32 and out3.dtype == ref3.dtype
    assert jnp.allclose(out3, ref3, atol=1e-2, rtol=1e-2)

    print("KERNEL_OK")
</pallas_src>

<mosaic_0001>
module attributes {stable_mosaic.version = 11 : i64} {
  func.func @rmsnorm_kernel(%arg0: i32, %arg1: memref<16x128xf32, #tpu.memory_space<vmem>>, %arg2: memref<1x128xf32, #tpu.memory_space<vmem>>, %arg3: memref<16x128xf32, #tpu.memory_space<vmem>>) attributes {dimension_semantics = [#tpu.dimension_semantics<parallel>], iteration_bounds = array<i64: 1>, scalar_prefetch = 0 : i64, scratch_operands = 0 : i64, tpu.core_type = #tpu.core_type<tc>, window_params = [{transform_indices = @transform_0, window_bounds = array<i64: 16, 128>}, {pipeline_mode = #tpu.pipeline_mode<synchronous>, transform_indices = @transform_1, window_bounds = array<i64: 1, 128>}, {transform_indices = @transform_2, window_bounds = array<i64: 16, 128>}]} {
    %c0 = arith.constant 0 : index
    %c0_0 = arith.constant 0 : index
    %0 = vector.load %arg1[%c0, %c0_0] : memref<16x128xf32, #tpu.memory_space<vmem>>, vector<16x128xf32>
    %1 = arith.mulf %0, %0 : vector<16x128xf32>
    %cst = arith.constant dense<0.000000e+00> : vector<16xf32>
    %2 = vector.multi_reduction <add>, %1, %cst [1] : vector<16x128xf32> to vector<16xf32>
    %3 = vector.shape_cast %2 : vector<16xf32> to vector<16x1xf32>
    %cst_1 = arith.constant 1.280000e+02 : f32
    %4 = vector.broadcast %cst_1 : f32 to vector<16x1xf32>
    %5 = arith.divf %3, %4 : vector<16x1xf32>
    %cst_2 = arith.constant 9.99999997E-7 : f32
    %6 = vector.broadcast %cst_2 : f32 to vector<16x1xf32>
    %7 = arith.addf %5, %6 : vector<16x1xf32>
    %8 = math.rsqrt %7 : vector<16x1xf32>
    %9 = vector.broadcast %8 : vector<16x1xf32> to vector<16x128xf32>
    %10 = arith.mulf %0, %9 : vector<16x128xf32>
    %c0_3 = arith.constant 0 : index
    %c0_4 = arith.constant 0 : index
    %11 = vector.load %arg2[%c0_3, %c0_4] : memref<1x128xf32, #tpu.memory_space<vmem>>, vector<1x128xf32>
    %12 = vector.broadcast %11 : vector<1x128xf32> to vector<16x128xf32>
    %13 = arith.mulf %10, %12 : vector<16x128xf32>
    %c0_5 = arith.constant 0 : index
    %c0_6 = arith.constant 0 : index
    %14 = vector.load %arg3[%c0_5, %c0_6] : memref<16x128xf32, #tpu.memory_space<vmem>>, vector<16x128xf32>
    tpu.vector_store %arg3[%c0_5, %c0_6], %13 {strides = array<i32>} : memref<16x128xf32, #tpu.memory_space<vmem>>, vector<16x128xf32>,
    return
  }
  func.func @transform_0(%arg0: i32) -> (i32, i32) {
    %c0_i32 = arith.constant 0 : i32
    %c0_i32_0 = arith.constant 0 : i32
    return %arg0, %c0_i32 : i32, i32
  }
  func.func @transform_1(%arg0: i32) -> (i32, i32) {
    %c0_i32 = arith.constant 0 : i32
    %c0_i32_0 = arith.constant 0 : i32
    %c0_i32_1 = arith.constant 0 : i32
    return %c0_i32, %c0_i32_0 : i32, i32
  }
  func.func @transform_2(%arg0: i32) -> (i32, i32) {
    %c0_i32 = arith.constant 0 : i32
    %c0_i32_0 = arith.constant 0 : i32
    return %arg0, %c0_i32 : i32, i32
  }
}

</mosaic_0001>

<bundles_post_ra>
// kernel: rmsnorm.1
= control target key start
LH: loop header
LB: loop body
LE: loop exit
PB: predicated region body
PF: predicated region fallthrough
CT: control target
= control target key end

     0   :  { %7 = vsyncpa [#allocation3], 0  ;;  %s180_s0 = inlined_call_operand.hbm [shape: f32[16,128], index: 0, kind: input, shape index: {}]   ;;  %s181_s1 = inlined_call_operand.vmem [shape: f32[1,128], index: 1, kind: input, shape index: {}]   ;;  %s182_s2 = inlined_call_operand.hbm [shape: f32[16,128], index: 2, kind: output, shape index: {}]  }
   0x1   :  { %8 = vsyncpa [#allocation4], 0  ;;  %s128_s9 = smov [#allocation2]   ;;  %s80_s13 = scalar_lea.hbm %s180_s0, 256 }
   0x2   :  { %s14_s10 = sshll.u32 %s128_s9, 4  ;;  %p81_p0 = scmp.ne.s32.totalorder %s180_s0, %s80_s13  ;;  %s15_s10 = int_to_ptr.vmem [resolvable:$true] %s14_s10 }
   0x3   :  { %p84_p1 = scmp.lt.u32.totalorder %s80_s13, %s180_s0 }
   0x5   :  { %p86_p2 = pnand %p84_p1, %p81_p0 }
   0x7   :  { %89 = shalt.err (!%p86_p2)
}
   0x8   :  { %s90_s18 = scalar_lea.vmem %s15_s10, 256  ;;  %p95_p4 = scmp.lt.s32.totalorder %s15_s10, %s15_s10 }
   0x9   :  { %p91_p3 = scmp.ne.s32.totalorder %s15_s10, %s90_s18  ;;  %p96_p5 = scmp.lt.s32.totalorder %s90_s18, %s90_s18 }
   0xb   :  { %p97_p6 = por %p96_p5, %p95_p4 }
   0xd   :  { %p98_p7 = pnand %p97_p6, %p91_p3 }
   0xf   :  { %101 = shalt.err (!%p98_p7)
}
  0x10   :  { %s129_s19 = smov 128   ;;  %s130_s20 = smov 8  }
  0x11   :  { %20 = dma.hbm_to_vmem [thread:$0]  %s180_s0, 256, %s15_s10, [#allocation3], %s129_s19, %s129_s19, %s130_s20  }
  0x12   :  { %124 = dma.done.wait [#allocation3], 256  }
  0x13   :  { %125 = vsyncadd [#allocation3], 4294967040  ;;  %v26_v0 = vld [vmem:[#allocation2] sm:$0xff]  ;;  %v27_v1 = vld [vmem:[#allocation2 + $0x8] sm:$0xff]  ;;  %s131_s0 = smov [#allocation5]  }
  0x14   :  { %v28_v2 = vmul.f32 %v26_v0, %v26_v0  ;;  %v29_v3 = vmul.f32 %v27_v1, %v27_v1  ;;  %v71_v11 = vld [vmem:[%s181_s1] ss:$0 sm:$0xff]  ;;  %s59_s25 = sshll.u32 %s131_s0, 4  ;;  %s60_s25 = int_to_ptr.vmem [resolvable:$true] %s59_s25 }
  0x15   :  { %s102_s26 = scalar_lea.vmem %s60_s25, 256  ;;  %p107_p9 = scmp.lt.s32.totalorder %s60_s25, %s60_s25 }
  0x16   :  { %30 = vadd.xlane.f32.xlu0 %v28_v2  ;;  %p103_p8 = scmp.ne.s32.totalorder %s60_s25, %s102_s26  ;;  %p108_p10 = scmp.lt.s32.totalorder %s102_s26, %s102_s26 }
  0x18   :  { %p109_p11 = por %p108_p10, %p107_p9 }
  0x1a   :  { %32 = vadd.xlane.f32.xlu0 %v29_v3  ;;  %p110_p12 = pnand %p109_p11, %p103_p8 }
  0xa3   :  { %v31_v4 = vpop.xlane.xlu0 %30 }
  0xa4   :  { %v35_v5 = vmul.f32 0.0078125, %v31_v4 }
  0xa6   :  { %v37_v6 = vadd.f32 1e-06, %v35_v5 }
  0xa7   :  { %v33_v7 = vpop.xlane.xlu0 %32 }
  0xa8   :  { %76 = vrsqrt.f32 %v37_v6  ;;  %v36_v8 = vmul.f32 0.0078125, %v33_v7 }
  0xaa   :  { %v38_v9 = vadd.f32 1e-06, %v36_v8 }
  0xac   :  { %78 = vrsqrt.f32 %v38_v9 }
  0xb2   :  { %v77_v10 = vpop.eup %76 }
  0xb3   :  { %v41_v12 = vmul.f32 %v77_v10, %v26_v0 }
  0xb5   :  { %v50_v13 = vmul.f32 %v71_v11, %v41_v12 }
  0xb6   :  { %v79_v14 = vpop.eup %78 }
  0xb7   :  { %v42_v15 = vmul.f32 %v79_v14, %v27_v1  ;;  %52 = vst [vmem:[#allocation5] sm:$0xff] %v50_v13 }
  0xb9   :  { %v51_v16 = vmul.f32 %v71_v11, %v42_v15 }
  0xbb   :  { %53 = vst [vmem:[#allocation5 + $0x8] sm:$0xff] %v51_v16 }
  0xbc   :  { %113 = shalt.err (!%p110_p12)
}
  0xbd   :  { %s114_s1 = scalar_lea.hbm %s182_s2, 256 }
  0xbe   :  { %p115_p13 = scmp.ne.s32.totalorder %s182_s2, %s114_s1  ;;  %p118_p0 = scmp.lt.u32.totalorder %s114_s1, %s182_s2 }
  0xc0   :  { %p120_p1 = pnand %p118_p0, %p115_p13 }
  0xc2   :  { %123 = shalt.err (!%p120_p1)
}
  0xc3   :  { %65 = dma.vmem_to_hbm [thread:$0]  %s60_s25, 256, %s182_s2, [#allocation4], %s129_s19, %s129_s19, %s130_s20  }
  0xc4   :  { %126 = dma.done.wait [#allocation4], 256  }
  0xc5   :  { %127 = vsyncadd [#allocation4], 4294967040 }
  0xc6   :  { %69 = vsyncpa [#allocation3], 1 }
  0xc7   :  { %70 = vsyncpa [#allocation4], 1 }

</bundles_post_ra>
